<compile_context>
chip_gen: v6e
topology: v6e:2x2x1
jax: 0.10.0
libtpu: 0.0.40
codegen_flags: <defaults>
</compile_context>

<pallas_src>
import jax
import jax.numpy as jnp
from jax.experimental import pallas as pl
from jax.experimental.pallas import tpu as pltpu


def _copy_kernel(x_ref, o_ref):
    # Pure pass-through: copy the current VMEM tile to the output tile.
    o_ref[...] = x_ref[...]


def _round_down(v: int, m: int) -> int:
    return (v // m) * m


def _round_up(v: int, m: int) -> int:
    return ((v + m - 1) // m) * m


def base_model_forward(x: jax.Array) -> jax.Array:
    """Identity forward pass implemented as a streaming Pallas TPU kernel.

    x: any-rank array (e.g. NCHW). Returned unchanged (same shape & dtype).
    """
    orig_shape = x.shape
    if x.size == 0:
        return x

    total = int(x.size)
    itemsize = jnp.dtype(x.dtype).itemsize
    # Packed-sublane multiple for the dtype: 8 (f32), 16 (bf16/f16), 32 (int8).
    sublane = max(8, (8 * 4) // itemsize)

    # ---- Choose a lane-dense 2-D slab (last dim = large multiple of 128) ----
    lane = None
    # Prefer a lane width that also leaves >= `sublane` rows so VMEM tiles are
    # fully packed (no wasted sublanes).
    for cand in (2048, 1024, 512, 256, 128):
        if total % cand == 0 and total // cand >= sublane:
            lane = cand
            break
    if lane is None:
        for cand in (2048, 1024, 512, 256, 128):
            if total % cand == 0:
                lane = cand
                break

    padded = False
    if lane is not None:
        x2 = x.reshape(-1, lane)
    else:
        # Ragged fallback: pad the flat element stream to a multiple of 512
        # lanes, tile it like the main path, slice the pad off afterwards.
        # Guarantees every block is (sublane, 128)-aligned and VMEM-bounded
        # for ANY input shape (previous version could request an oversized
        # single block here).
        lane = 512
        pad = (-total) % lane
        x2 = jnp.pad(x.reshape(-1), (0, pad)).reshape(-1, lane)
        padded = True

    R, C = x2.shape

    # ---- Tile sizing ---------------------------------------------------------
    # ~6 MiB per buffer; in+out, double-buffered => ~24 MiB working set, well
    # under the raised 48 MiB scoped-VMEM limit on every generation.
    max_tile_bytes = 6 * 1024 * 1024
    row_bytes = C * itemsize
    max_rows = max(1, max_tile_bytes // row_bytes)

    if R <= max_rows:
        tile_r = R  # full extent -> always a legal block dim
    else:
        tile_r = max(sublane, _round_down(max_rows, sublane))

    # Megacore (v7x: 2 TensorCores, each with its own HBM path): make sure the
    # grid has >= 2 steps when the array is big enough for the split to pay.
    if tile_r == R and R >= 2 * sublane and R * row_bytes > (1 << 20):
        tile_r = max(sublane, _round_up(-(-R // 2), sublane))

    grid = (pl.cdiv(R, tile_r),)

    out2 = pl.pallas_call(
        _copy_kernel,
        out_shape=jax.ShapeDtypeStruct((R, C), x2.dtype),
        grid_spec=pltpu.PrefetchScalarGridSpec(
            num_scalar_prefetch=0,
            grid=grid,
            in_specs=[pl.BlockSpec((tile_r, C), lambda i: (i, 0))],
            out_specs=pl.BlockSpec((tile_r, C), lambda i: (i, 0)),
        ),
        compiler_params=pltpu.CompilerParams(
            dimension_semantics=("parallel",),
            vmem_limit_bytes=48 * 1024 * 1024,
        ),
    )(x2)

    out = out2.reshape(-1)
    if padded:
        out = out[:total]
    return out.reshape(orig_shape)


if __name__ == "__main__":
    key = jax.random.PRNGKey(0)
    # Small NCHW-style input consistent with a generic vision base model.
    x = jax.random.normal(key, (2, 4, 16, 16), dtype=jnp.float32)

    y = base_model_forward(x)
    y = jax.block_until_ready(y)

    assert y.shape == x.shape and y.dtype == x.dtype
    assert bool(jnp.allclose(y, x)), "identity forward mismatch"
    print("KERNEL_OK")
</pallas_src>

<mosaic_0001>
module attributes {stable_mosaic.version = 11 : i64} {
  func.func @_copy_kernel(%arg0: i32, %arg1: memref<8x256xf32, #tpu.memory_space<vmem>>, %arg2: memref<8x256xf32, #tpu.memory_space<vmem>>) attributes {dimension_semantics = [#tpu.dimension_semantics<parallel>], iteration_bounds = array<i64: 1>, scalar_prefetch = 0 : i64, scratch_operands = 0 : i64, tpu.core_type = #tpu.core_type<tc>, window_params = [{transform_indices = @transform_0, window_bounds = array<i64: 8, 256>}, {transform_indices = @transform_1, window_bounds = array<i64: 8, 256>}]} {
    %c0 = arith.constant 0 : index
    %c0_0 = arith.constant 0 : index
    %0 = vector.load %arg1[%c0, %c0_0] : memref<8x256xf32, #tpu.memory_space<vmem>>, vector<8x256xf32>
    %c0_1 = arith.constant 0 : index
    %c0_2 = arith.constant 0 : index
    %1 = vector.load %arg2[%c0_1, %c0_2] : memref<8x256xf32, #tpu.memory_space<vmem>>, vector<8x256xf32>
    tpu.vector_store %arg2[%c0_1, %c0_2], %0 {strides = array<i32>} : memref<8x256xf32, #tpu.memory_space<vmem>>, vector<8x256xf32>,
    return
  }
  func.func @transform_0(%arg0: i32) -> (i32, i32) {
    %c0_i32 = arith.constant 0 : i32
    %c0_i32_0 = arith.constant 0 : i32
    return %arg0, %c0_i32 : i32, i32
  }
  func.func @transform_1(%arg0: i32) -> (i32, i32) {
    %c0_i32 = arith.constant 0 : i32
    %c0_i32_0 = arith.constant 0 : i32
    return %arg0, %c0_i32 : i32, i32
  }
}

</mosaic_0001>

<bundles_post_ra>
// kernel: tpu_custom_call.1
= control target key start
LH: loop header
LB: loop body
LE: loop exit
PB: predicated region body
PF: predicated region fallthrough
CT: control target
= control target key end

     0   :  { %6 = vsyncpa [#allocation3], 0  ;;  %s104_s0 = inlined_call_operand.hbm [shape: f32[8,256], index: 0, kind: input, shape index: {}]   ;;  %s105_s1 = inlined_call_operand.hbm [shape: f32[8,256], index: 1, kind: output, shape index: {}]  }
   0x1   :  { %7 = vsyncpa [#allocation4], 0  ;;  %s86_s6 = smov [#allocation2]  }
   0x2   :  { %s14_s7 = sshll.u32 %s86_s6, 4  ;;  %s15_s7 = int_to_ptr.vmem [resolvable:$true] %s14_s7 }
   0x3   :  { %s50_s8 = scalar_lea.vmem %s15_s7, 256  ;;  %p55_p1 = scmp.lt.s32.totalorder %s15_s7, %s15_s7 }
   0x4   :  { %p51_p0 = scmp.ne.s32.totalorder %s15_s7, %s50_s8  ;;  %p56_p2 = scmp.lt.s32.totalorder %s50_s8, %s50_s8 }
   0x6   :  { %p57_p3 = por %p56_p2, %p55_p1 }
   0x8   :  { %p58_p4 = pnand %p57_p3, %p51_p0 }
   0xa   :  { %61 = shalt.err (!%p58_p4)
}
   0xb   :  { %17 = dma.hbm_to_vmem [thread:$0]  %s104_s0, 256, %s15_s7, [#allocation3]  }
   0xc   :  { %82 = dma.done.wait [#allocation3], 256  }
   0xd   :  { %83 = vsyncadd [#allocation3], 4294967040  ;;  %s87_s11 = smov [#allocation5]   ;;  %v21_v0 = vld [vmem:[#allocation2] sm:$0xff]  ;;  %v22_v1 = vld [vmem:[#allocation2 + $0x8] sm:$0xff] }
   0xe   :  { %s31_s12 = sshll.u32 %s87_s11, 4  ;;  %23 = vst [vmem:[#allocation5] sm:$0xff] %v21_v0  ;;  %24 = vst [vmem:[#allocation5 + $0x8] sm:$0xff] %v22_v1  ;;  %s32_s12 = int_to_ptr.vmem [resolvable:$true] %s31_s12 }
   0xf   :  { %s62_s13 = scalar_lea.vmem %s32_s12, 256  ;;  %p67_p6 = scmp.lt.s32.totalorder %s32_s12, %s32_s12 }
  0x10   :  { %p63_p5 = scmp.ne.s32.totalorder %s32_s12, %s62_s13  ;;  %p68_p7 = scmp.lt.s32.totalorder %s62_s13, %s62_s13 }
  0x12   :  { %p69_p8 = por %p68_p7, %p67_p6 }
  0x14   :  { %p70_p9 = pnand %p69_p8, %p63_p5 }
  0x16   :  { %73 = shalt.err (!%p70_p9)
}
  0x17   :  { %34 = dma.vmem_to_hbm [thread:$0]  %s32_s12, 256, %s105_s1, [#allocation4]  }
  0x18   :  { %84 = dma.done.wait [#allocation4], 256  }
  0x19   :  { %85 = vsyncadd [#allocation4], 4294967040 }
  0x1a   :  { %38 = vsyncpa [#allocation3], 1 }
  0x1b   :  { %39 = vsyncpa [#allocation4], 1 }

</bundles_post_ra>
